<compile_context>
chip_gen: v7x
topology: tpu7x:2x2x1
jax: 0.10.0
libtpu: 0.0.40
codegen_flags: <defaults>
</compile_context>

<pallas_src>
import functools

import jax
import jax.numpy as jnp
from jax import lax
from jax.experimental import pallas as pl
from jax.experimental.pallas import tpu as pltpu


def _round_up(v, m):
    return (v + m - 1) // m * m


@functools.lru_cache(maxsize=1)
def _hw_info():
    """(vmem_capacity_bytes, two_tensorcores) with safe fallbacks."""
    vmem = 128 * 1024 * 1024
    try:
        info = pltpu.get_tpu_info()
        vmem = int(getattr(info, "vmem_capacity_bytes", vmem)) or vmem
    except Exception:
        pass
    # Heuristic: v7x exposes 64 MiB VMEM per TensorCore and has 2 TCs/chip.
    two_cores = vmem <= 96 * 1024 * 1024
    return vmem, two_cores


def _divisors_x128(dim):
    """Divisors of `dim` (a multiple of 128) that are multiples of 128."""
    u = dim // 128
    return [128 * d for d in range(1, u + 1) if u % d == 0]


def _vmem_footprint(tm, tn, tk, n_w, n_b, itemsize=4):
    w = 2 * n_w * tn * tk * itemsize          # double-buffered weight streams
    x = 2 * tm * tk * itemsize                # double-buffered x stream
    o = 2 * tm * tn * itemsize                # double-buffered output
    acc = tm * tn * 4                          # f32 accumulator scratch
    b = 2 * n_b * tn * itemsize                # bias rows
    return w + x + o + acc + b


def _pick_nk_tiles(tm, Np, Kp, n_w, n_b, budget, two_cores, tn_cap, tk_cap):
    tn_cands = [t for t in _divisors_x128(Np) if t <= tn_cap]
    tk_cands = [t for t in _divisors_x128(Kp) if t <= tk_cap]
    best_tn, best_tk = tn_cands[0], tk_cands[0]
    # Maximize tn*tk (== minimize grid steps) under the VMEM budget.
    for tn in tn_cands:
        for tk in tk_cands:
            if (_vmem_footprint(tm, tn, tk, n_w, n_b) <= budget
                    and tn * tk > best_tn * best_tk):
                best_tn, best_tk = tn, tk
    # v7x: make sure both TensorCores get at least one (i, j) block.
    if two_cores and (Np // best_tn) < 2 and tm == tm:  # grid_M is 1 when tm==Mp
        smaller = [t for t in tn_cands if t < best_tn]
        if smaller and (Np // best_tn) * 1 < 2:
            best_tn = smaller[-1]
    return best_tn, best_tk


# ----------------------------- kernels -----------------------------

def _noisy_linear_train_kernel(x_ref, wmu_ref, wsig_ref, weps_ref,
                               bmu_ref, bsig_ref, beps_ref, o_ref, acc_ref):
    k = pl.program_id(2)

    @pl.when(k == 0)
    def _():
        acc_ref[...] = jnp.zeros_like(acc_ref)

    # Effective noisy weight tile, (tn, tk), combined on-chip (VPU).
    # sigma/eps are upcast so they may be stored in bf16 (drop-in BW win).
    w_eff = (wmu_ref[...]
             + wsig_ref[...].astype(jnp.float32) * weps_ref[...].astype(jnp.float32))
    # Contract last dims of x:(tm,tk) and w_eff:(tn,tk) -> (tm,tn). No transpose.
    acc_ref[...] += lax.dot_general(
        x_ref[...], w_eff,
        dimension_numbers=(((1,), (1,)), ((), ())),
        preferred_element_type=jnp.float32)

    @pl.when(k == pl.num_programs(2) - 1)
    def _():
        b_eff = (bmu_ref[...]
                 + bsig_ref[...].astype(jnp.float32) * beps_ref[...].astype(jnp.float32))
        o_ref[...] = (acc_ref[...] + b_eff).astype(o_ref.dtype)


def _linear_eval_kernel(x_ref, wmu_ref, bmu_ref, o_ref, acc_ref):
    k = pl.program_id(2)

    @pl.when(k == 0)
    def _():
        acc_ref[...] = jnp.zeros_like(acc_ref)

    acc_ref[...] += lax.dot_general(
        x_ref[...], wmu_ref[...],
        dimension_numbers=(((1,), (1,)), ((), ())),
        preferred_element_type=jnp.float32)

    @pl.when(k == pl.num_programs(2) - 1)
    def _():
        o_ref[...] = (acc_ref[...] + bmu_ref[...]).astype(o_ref.dtype)


# ----------------------------- wrapper -----------------------------

def _tiled_linear(x, weights, biases, kernel, tn_cap, tk_cap):
    """Shared tiled pallas_call. weights: list of (N,K); biases: list of (N,)."""
    M, K = x.shape
    N = weights[0].shape[0]
    n_w, n_b = len(weights), len(biases)

    vmem_cap, two_cores = _hw_info()
    budget = int(0.6 * vmem_cap)
    if tn_cap is None:
        tn_cap = 512
    if tk_cap is None:
        tk_cap = 2048 if vmem_cap > 96 * 1024 * 1024 else 1024
    tn_cap, tk_cap = max(128, tn_cap), max(128, tk_cap)

    # Hardware-minimum padding only: lane dims -> x128, M sublane dim -> x8.
    Np, Kp = _round_up(N, 128), _round_up(K, 128)
    Mp8 = _round_up(M, 8)
    if Mp8 <= 512:
        tm, Mp = Mp8, Mp8                      # grid_M == 1: weights read once
    else:
        tm, Mp = 512, _round_up(M, 512)

    tn, tk = _pick_nk_tiles(tm, Np, Kp, n_w, n_b, budget, two_cores,
                            tn_cap, tk_cap)

    # Pads are skipped (no HBM pass) when shapes are already aligned.  For
    # production layers with misaligned N/K, pad params once at reset_noise.
    xp = x if (Mp == M and Kp == K) else jnp.pad(x, ((0, Mp - M), (0, Kp - K)))
    if Np == N and Kp == K:
        wps = list(weights)
    else:
        wps = [jnp.pad(w, ((0, Np - N), (0, Kp - K))) for w in weights]
    if Np == N:
        bps = [b.reshape(1, Np) for b in biases]
    else:
        bps = [jnp.pad(b, (0, Np - N)).reshape(1, Np) for b in biases]

    grid = (Mp // tm, Np // tn, Kp // tk)

    in_specs = (
        [pl.BlockSpec((tm, tk), lambda i, j, k: (i, k))]            # x
        + [pl.BlockSpec((tn, tk), lambda i, j, k: (j, k))] * n_w    # weights
        + [pl.BlockSpec((1, tn), lambda i, j, k: (0, j))] * n_b     # biases
    )

    footprint = _vmem_footprint(tm, tn, tk, n_w, n_b)
    vmem_limit = max(16 * 1024 * 1024,
                     min(int(0.75 * vmem_cap), footprint + 32 * 1024 * 1024))

    flops = 2 * Mp * Np * Kp
    bytes_accessed = 4 * (Mp * Kp * grid[1]            # x re-read per N block
                          + n_w * Np * Kp * grid[0]    # weights per M block
                          + n_b * Np + Mp * Np)

    out = pl.pallas_call(
        kernel,
        out_shape=jax.ShapeDtypeStruct((Mp, Np), x.dtype),
        grid_spec=pltpu.PrefetchScalarGridSpec(
            num_scalar_prefetch=0,
            grid=grid,
            in_specs=in_specs,
            out_specs=pl.BlockSpec((tm, tn), lambda i, j, k: (i, j)),
            scratch_shapes=[pltpu.VMEM((tm, tn), jnp.float32)]),
        compiler_params=pltpu.CompilerParams(
            dimension_semantics=("parallel", "parallel", "arbitrary"),
            vmem_limit_bytes=vmem_limit),
        cost_estimate=pl.CostEstimate(
            flops=flops, transcendentals=0, bytes_accessed=bytes_accessed),
    )(xp, *wps, *bps)

    if Mp == M and Np == N:
        return out
    return out[:M, :N]


@functools.partial(jax.jit, static_argnames=("training", "tn_cap", "tk_cap"))
def noisy_linear(x, weight_mu, weight_sigma, weight_epsilon,
                 bias_mu, bias_sigma, bias_epsilon, *, training=True,
                 tn_cap=None, tk_cap=None):
    """Pallas implementation of NoisyLinear.forward."""
    if training:
        return _tiled_linear(
            x,
            [weight_mu, weight_sigma, weight_epsilon],
            [bias_mu, bias_sigma, bias_epsilon],
            _noisy_linear_train_kernel, tn_cap, tk_cap)
    # Eval path: mu-only kernel -> ~1/3 of the weight HBM bytes of training.
    return _tiled_linear(x, [weight_mu], [bias_mu], _linear_eval_kernel,
                         tn_cap, tk_cap)


def init_noisy_linear_params(key, in_features, out_features, std_init=0.5):
    """Deterministic parameter/buffer init matching NoisyLinear.__init__."""
    k_wmu, k_bmu, k_weps, k_beps = jax.random.split(key, 4)
    mu_range = 1.0 / jnp.sqrt(float(in_features))
    weight_mu = jax.random.uniform(
        k_wmu, (out_features, in_features), jnp.float32, -mu_range, mu_range)
    weight_sigma = jnp.full((out_features, in_features),
                            std_init / jnp.sqrt(float(in_features)), jnp.float32)
    bias_mu = jax.random.uniform(
        k_bmu, (out_features,), jnp.float32, -mu_range, mu_range)
    bias_sigma = jnp.full((out_features,),
                          std_init / jnp.sqrt(float(out_features)), jnp.float32)
    # reset_noise(): standard-normal noise (module defaults to training=True)
    weight_epsilon = jax.random.normal(k_weps, (out_features, in_features), jnp.float32)
    bias_epsilon = jax.random.normal(k_beps, (out_features,), jnp.float32)
    return dict(weight_mu=weight_mu, weight_sigma=weight_sigma,
                weight_epsilon=weight_epsilon, bias_mu=bias_mu,
                bias_sigma=bias_sigma, bias_epsilon=bias_epsilon)


def _ref_linear(x, w, b):
    return jnp.dot(x, w.T, precision=lax.Precision.HIGHEST) + b


if __name__ == "__main__":
    key = jax.random.PRNGKey(0)
    k_p1, k_x1, k_p2, k_x2 = jax.random.split(key, 4)

    # --- Small, unaligned shapes (exercise the pad fallback path) ---
    batch, in_features, out_features = 8, 32, 64
    p = init_noisy_linear_params(k_p1, in_features, out_features)
    x = jax.random.normal(k_x1, (batch, in_features), jnp.float32)

    y = noisy_linear(x, p["weight_mu"], p["weight_sigma"], p["weight_epsilon"],
                     p["bias_mu"], p["bias_sigma"], p["bias_epsilon"],
                     training=True)
    jax.block_until_ready(y)
    w_eff = p["weight_mu"] + p["weight_sigma"] * p["weight_epsilon"]
    b_eff = p["bias_mu"] + p["bias_sigma"] * p["bias_epsilon"]
    y_ref = _ref_linear(x, w_eff, b_eff)
    assert y.shape == (batch, out_features)
    assert jnp.allclose(y, y_ref, atol=1e-5, rtol=1e-5)

    y_eval = noisy_linear(x, p["weight_mu"], p["weight_sigma"],
                          p["weight_epsilon"], p["bias_mu"], p["bias_sigma"],
                          p["bias_epsilon"], training=False)
    jax.block_until_ready(y_eval)
    y_eval_ref = _ref_linear(x, p["weight_mu"], p["bias_mu"])
    assert jnp.allclose(y_eval, y_eval_ref, atol=1e-5, rtol=1e-5)

    # --- 128-aligned shapes: pad-free fast path, weights streamed once ---
    batch2, in2, out2 = 16, 640, 384
    p2 = init_noisy_linear_params(k_p2, in2, out2)
    x2 = jax.random.normal(k_x2, (batch2, in2), jnp.float32)
    w_eff2 = p2["weight_mu"] + p2["weight_sigma"] * p2["weight_epsilon"]
    b_eff2 = p2["bias_mu"] + p2["bias_sigma"] * p2["bias_epsilon"]
    y2_ref = _ref_linear(x2, w_eff2, b_eff2)

    y2 = noisy_linear(x2, p2["weight_mu"], p2["weight_sigma"],
                      p2["weight_epsilon"], p2["bias_mu"], p2["bias_sigma"],
                      p2["bias_epsilon"], training=True)
    jax.block_until_ready(y2)
    assert y2.shape == (batch2, out2)
    assert jnp.allclose(y2, y2_ref, atol=1e-3, rtol=1e-4)

    # Same shapes with forced small tiles: exercises a multi-block
    # (1 x 3 x 5) grid, i.e. the k-axis accumulator + finalize logic.
    y2_tiled = noisy_linear(x2, p2["weight_mu"], p2["weight_sigma"],
                            p2["weight_epsilon"], p2["bias_mu"],
                            p2["bias_sigma"], p2["bias_epsilon"],
                            training=True, tn_cap=128, tk_cap=128)
    jax.block_until_ready(y2_tiled)
    assert jnp.allclose(y2_tiled, y2_ref, atol=1e-3, rtol=1e-4)

    print("KERNEL_OK")
</pallas_src>

<mosaic_0001>
module attributes {stable_mosaic.version = 11 : i64} {
  func.func @_noisy_linear_train_kernel(%arg0: i32, %arg1: i32, %arg2: i32, %arg3: memref<8x128xf32, #tpu.memory_space<vmem>>, %arg4: memref<128x128xf32, #tpu.memory_space<vmem>>, %arg5: memref<128x128xf32, #tpu.memory_space<vmem>>, %arg6: memref<128x128xf32, #tpu.memory_space<vmem>>, %arg7: memref<1x128xf32, #tpu.memory_space<vmem>>, %arg8: memref<1x128xf32, #tpu.memory_space<vmem>>, %arg9: memref<1x128xf32, #tpu.memory_space<vmem>>, %arg10: memref<8x128xf32, #tpu.memory_space<vmem>>, %arg11: memref<8x128xf32, #tpu.memory_space<vmem>>) attributes {dimension_semantics = [#tpu.dimension_semantics<parallel>, #tpu.dimension_semantics<parallel>, #tpu.dimension_semantics<arbitrary>], iteration_bounds = array<i64: 1, 1, 1>, scalar_prefetch = 0 : i64, scratch_operands = 1 : i64, tpu.core_type = #tpu.core_type<tc>, window_params = [{transform_indices = @transform_0, window_bounds = array<i64: 8, 128>}, {transform_indices = @transform_1, window_bounds = array<i64: 128, 128>}, {transform_indices = @transform_2, window_bounds = array<i64: 128, 128>}, {transform_indices = @transform_3, window_bounds = array<i64: 128, 128>}, {transform_indices = @transform_4, window_bounds = array<i64: 1, 128>}, {transform_indices = @transform_5, window_bounds = array<i64: 1, 128>}, {transform_indices = @transform_6, window_bounds = array<i64: 1, 128>}, {transform_indices = @transform_7, window_bounds = array<i64: 8, 128>}]} {
    %c0_i32 = arith.constant 0 : i32
    %0 = arith.cmpi eq, %arg2, %c0_i32 : i32
    %1 = arith.extui %0 : i1 to i32
    %c0_i32_0 = arith.constant 0 : i32
    %2 = arith.cmpi ne, %1, %c0_i32_0 : i32
    scf.if %2 {
      %cst_14 = arith.constant 0.000000e+00 : f32
      %16 = vector.broadcast %cst_14 : f32 to vector<8x128xf32>
      %c0_15 = arith.constant 0 : index
      %c0_16 = arith.constant 0 : index
      %17 = vector.load %arg11[%c0_15, %c0_16] : memref<8x128xf32, #tpu.memory_space<vmem>>, vector<8x128xf32>
      tpu.vector_store %arg11[%c0_15, %c0_16], %16 {strides = array<i32>} : memref<8x128xf32, #tpu.memory_space<vmem>>, vector<8x128xf32>,
    } else {
    }
    %c0 = arith.constant 0 : index
    %c0_1 = arith.constant 0 : index
    %3 = vector.load %arg4[%c0, %c0_1] : memref<128x128xf32, #tpu.memory_space<vmem>>, vector<128x128xf32>
    %c0_2 = arith.constant 0 : index
    %c0_3 = arith.constant 0 : index
    %4 = vector.load %arg5[%c0_2, %c0_3] : memref<128x128xf32, #tpu.memory_space<vmem>>, vector<128x128xf32>
    %c0_4 = arith.constant 0 : index
    %c0_5 = arith.constant 0 : index
    %5 = vector.load %arg6[%c0_4, %c0_5] : memref<128x128xf32, #tpu.memory_space<vmem>>, vector<128x128xf32>
    %6 = arith.mulf %4, %5 : vector<128x128xf32>
    %7 = arith.addf %3, %6 : vector<128x128xf32>
    %c0_6 = arith.constant 0 : index
    %c0_7 = arith.constant 0 : index
    %8 = vector.load %arg11[%c0_6, %c0_7] : memref<8x128xf32, #tpu.memory_space<vmem>>, vector<8x128xf32>
    %c0_8 = arith.constant 0 : index
    %c0_9 = arith.constant 0 : index
    %9 = vector.load %arg3[%c0_8, %c0_9] : memref<8x128xf32, #tpu.memory_space<vmem>>, vector<8x128xf32>
    %cst = arith.constant dense<0.000000e+00> : vector<8x128xf32>
    %10 = tpu.matmul %9, %7, %cst {dimension_numbers = #tpu.dot_dimension_numbers<[1], [1], [0], [0], [0, 0, 1, 0], [], []>} : vector<8x128xf32>, vector<128x128xf32>, vector<8x128xf32> -> vector<8x128xf32>
    %11 = arith.addf %8, %10 : vector<8x128xf32>
    %c0_10 = arith.constant 0 : index
    %c0_11 = arith.constant 0 : index
    %12 = vector.load %arg11[%c0_10, %c0_11] : memref<8x128xf32, #tpu.memory_space<vmem>>, vector<8x128xf32>
    tpu.vector_store %arg11[%c0_10, %c0_11], %11 {strides = array<i32>} : memref<8x128xf32, #tpu.memory_space<vmem>>, vector<8x128xf32>,
    %c0_i32_12 = arith.constant 0 : i32
    %13 = arith.cmpi eq, %arg2, %c0_i32_12 : i32
    %14 = arith.extui %13 : i1 to i32
    %c0_i32_13 = arith.constant 0 : i32
    %15 = arith.cmpi ne, %14, %c0_i32_13 : i32
    scf.if %15 {
      %c0_14 = arith.constant 0 : index
      %c0_15 = arith.constant 0 : index
      %16 = vector.load %arg7[%c0_14, %c0_15] : memref<1x128xf32, #tpu.memory_space<vmem>>, vector<1x128xf32>
      %c0_16 = arith.constant 0 : index
      %c0_17 = arith.constant 0 : index
      %17 = vector.load %arg8[%c0_16, %c0_17] : memref<1x128xf32, #tpu.memory_space<vmem>>, vector<1x128xf32>
      %c0_18 = arith.constant 0 : index
      %c0_19 = arith.constant 0 : index
      %18 = vector.load %arg9[%c0_18, %c0_19] : memref<1x128xf32, #tpu.memory_space<vmem>>, vector<1x128xf32>
      %19 = arith.mulf %17, %18 : vector<1x128xf32>
      %20 = arith.addf %16, %19 : vector<1x128xf32>
      %c0_20 = arith.constant 0 : index
      %c0_21 = arith.constant 0 : index
      %21 = vector.load %arg11[%c0_20, %c0_21] : memref<8x128xf32, #tpu.memory_space<vmem>>, vector<8x128xf32>
      %22 = vector.broadcast %20 : vector<1x128xf32> to vector<8x128xf32>
      %23 = arith.addf %21, %22 : vector<8x128xf32>
      %c0_22 = arith.constant 0 : index
      %c0_23 = arith.constant 0 : index
      %24 = vector.load %arg10[%c0_22, %c0_23] : memref<8x128xf32, #tpu.memory_space<vmem>>, vector<8x128xf32>
      tpu.vector_store %arg10[%c0_22, %c0_23], %23 {strides = array<i32>} : memref<8x128xf32, #tpu.memory_space<vmem>>, vector<8x128xf32>,
    } else {
    }
    return
  }
  func.func @transform_0(%arg0: i32, %arg1: i32, %arg2: i32) -> (i32, i32) {
    %c0_i32 = arith.constant 0 : i32
    return %arg0, %arg2 : i32, i32
  }
  func.func @transform_1(%arg0: i32, %arg1: i32, %arg2: i32) -> (i32, i32) {
    %c0_i32 = arith.constant 0 : i32
    return %arg1, %arg2 : i32, i32
  }
  func.func @transform_2(%arg0: i32, %arg1: i32, %arg2: i32) -> (i32, i32) {
    %c0_i32 = arith.constant 0 : i32
    return %arg1, %arg2 : i32, i32
  }
  func.func @transform_3(%arg0: i32, %arg1: i32, %arg2: i32) -> (i32, i32) {
    %c0_i32 = arith.constant 0 : i32
    return %arg1, %arg2 : i32, i32
  }
  func.func @transform_4(%arg0: i32, %arg1: i32, %arg2: i32) -> (i32, i32) {
    %c0_i32 = arith.constant 0 : i32
    %c0_i32_0 = arith.constant 0 : i32
    return %c0_i32, %arg1 : i32, i32
  }
  func.func @transform_5(%arg0: i32, %arg1: i32, %arg2: i32) -> (i32, i32) {
    %c0_i32 = arith.constant 0 : i32
    %c0_i32_0 = arith.constant 0 : i32
    return %c0_i32, %arg1 : i32, i32
  }
  func.func @transform_6(%arg0: i32, %arg1: i32, %arg2: i32) -> (i32, i32) {
    %c0_i32 = arith.constant 0 : i32
    %c0_i32_0 = arith.constant 0 : i32
    return %c0_i32, %arg1 : i32, i32
  }
  func.func @transform_7(%arg0: i32, %arg1: i32, %arg2: i32) -> (i32, i32) {
    %c0_i32 = arith.constant 0 : i32
    return %arg0, %arg1 : i32, i32
  }
}

</mosaic_0001>

<bundles_post_ra>
// kernel: noisy_linear.1
= control target key start
LH: loop header
LB: loop body
LE: loop exit
PB: predicated region body
PF: predicated region fallthrough
CT: control target
= control target key end

     0   :  { %v321_v3 = vmov 0.0|0.0   ;;  %vm322_vm0 = vmmov 0   ;;  %v323_v7 = vmov 0.0   ;;  %s541_s0 = inlined_call_operand.vmem [shape: f32[8,128], index: 0, kind: input, shape index: {}]   ;;  %s542_s1 = inlined_call_operand.vmem [shape: f32[128,128], index: 1, kind: input, shape index: {}]   ;;  %s543_s2 = inlined_call_operand.vmem [shape: f32[128,128], index: 2, kind: input, shape index: {}]   ;;  %s544_s3 = inlined_call_operand.vmem [shape: f32[128,128], index: 3, kind: input, shape index: {}]   ;;  %s545_s4 = inlined_call_operand.vmem [shape: f32[1,128], index: 4, kind: input, shape index: {}]   ;;  %s546_s5 = inlined_call_operand.vmem [shape: f32[1,128], index: 5, kind: input, shape index: {}]   ;;  %s547_s6 = inlined_call_operand.vmem [shape: f32[1,128], index: 6, kind: input, shape index: {}]   ;;  %s548_s7 = inlined_call_operand.hbm [shape: f32[8,128], index: 7, kind: output, shape index: {}]  }
   0x1   :  { %v32_v0 = vld [vmem:[%s542_s1] sm:$0xff]  ;;  %v33_v1 = vld [vmem:[%s542_s1 + $0x8] sm:$0xff]  ;;  %269 = vmatprep.subr.bf16.mxu0 %v321_v3  ;;  %266 = vmatprep.mubr.msk.f32.mxu0 %vm322_vm0, %v323_v7  ;;  %v50_v10 = vld [vmem:[%s543_s2 + $0x10] sm:$0xff] }
   0x2   :  { %v48_v2 = vld [vmem:[%s543_s2] sm:$0xff]  ;;  %v49_v4 = vld [vmem:[%s543_s2 + $0x8] sm:$0xff]  ;;  %v51_v11 = vld [vmem:[%s543_s2 + $0x18] sm:$0xff] }
   0x3   :  { %v64_v5 = vld [vmem:[%s544_s3] sm:$0xff]  ;;  %v65_v6 = vld [vmem:[%s544_s3 + $0x8] sm:$0xff]  ;;  %v66_v12 = vld [vmem:[%s544_s3 + $0x10] sm:$0xff] }
   0x4   :  { %v80_v8 = vmul.f32 %v64_v5, %v48_v2  ;;  %v81_v9 = vmul.f32 %v65_v6, %v49_v4  ;;  %v67_v13 = vld [vmem:[%s544_s3 + $0x18] sm:$0xff]  ;;  %v82_v16 = vmul.f32 %v66_v12, %v50_v10  ;;  %v34_v18 = vld [vmem:[%s542_s1 + $0x10] sm:$0xff]  ;;  %v52_v23 = vld [vmem:[%s543_s2 + $0x20] sm:$0xff] }
   0x5   :  { %v83_v17 = vmul.f32 %v67_v13, %v51_v11  ;;  %v35_v19 = vld [vmem:[%s542_s1 + $0x18] sm:$0xff]  ;;  %v53_v24 = vld [vmem:[%s543_s2 + $0x28] sm:$0xff]  ;;  %v68_v25 = vld [vmem:[%s544_s3 + $0x20] sm:$0xff] }
   0x6   :  { %v96_v14 = vadd.f32 %v80_v8, %v32_v0  ;;  %v97_v15 = vadd.f32 %v81_v9, %v33_v1  ;;  %v98_v21 = vadd.f32 %v82_v16, %v34_v18  ;;  %v69_v26 = vld [vmem:[%s544_s3 + $0x28] sm:$0xff]  ;;  %v84_v28 = vmul.f32 %v68_v25, %v52_v23  ;;  %v36_v30 = vld [vmem:[%s542_s1 + $0x20] sm:$0xff]  ;;  %v54_v34 = vld [vmem:[%s543_s2 + $0x30] sm:$0xff] }
   0x7   :  { %v99_v22 = vadd.f32 %v83_v17, %v35_v19  ;;  %v85_v29 = vmul.f32 %v69_v26, %v53_v24  ;;  %v37_v31 = vld [vmem:[%s542_s1 + $0x28] sm:$0xff] }
   0x8   :  { %v270_v20 = vpack.c.bf16 %v97_v15, %v96_v14  ;;  %v100_v32 = vadd.f32 %v84_v28, %v36_v30 }
   0x9   :  { %v273_v27 = vpack.c.bf16 %v99_v22, %v98_v21  ;;  %v101_v33 = vadd.f32 %v85_v29, %v37_v31 }
   0xa   :  { %271 = vmatpush3.bf16.xpose.msra.mxu0 %v270_v20 }
   0xb   :  { %272 = vmatprep.subr.bf16.mxu0 %v321_v3 }
  0x12   :  { %274 = vmatpush3.bf16.xpose.msra.mxu0 %v273_v27 }
  0x13   :  { %12 = vsyncpa [#allocation4], 0  ;;  %275 = vmatprep.subr.bf16.mxu0 %v321_v3  ;;  %v55_v35 = vld [vmem:[%s543_s2 + $0x38] sm:$0xff]  ;;  %v70_v36 = vld [vmem:[%s544_s3 + $0x30] sm:$0xff]  ;;  %v276_v38 = vpack.c.bf16 %v101_v33, %v100_v32  ;;  %v196_v28 = vlaneseq }
  0x14   :  { %v71_v37 = vld [vmem:[%s544_s3 + $0x38] sm:$0xff]  ;;  %v86_v39 = vmul.f32 %v70_v36, %v54_v34  ;;  %v38_v41 = vld [vmem:[%s542_s1 + $0x30] sm:$0xff]  ;;  %v56_v45 = vld [vmem:[%s543_s2 + $0x40] sm:$0xff] }
  0x15   :  { %v87_v40 = vmul.f32 %v71_v37, %v55_v35  ;;  %v39_v42 = vld [vmem:[%s542_s1 + $0x38] sm:$0xff]  ;;  %v57_v46 = vld [vmem:[%s543_s2 + $0x48] sm:$0xff]  ;;  %v72_v47 = vld [vmem:[%s544_s3 + $0x40] sm:$0xff]  ;;  %v197_v32 = vshrl.u32 %v196_v28, 7 }
  0x16   :  { %v102_v43 = vadd.f32 %v86_v39, %v38_v41  ;;  %v73_v48 = vld [vmem:[%s544_s3 + $0x48] sm:$0xff]  ;;  %v88_v50 = vmul.f32 %v72_v47, %v56_v45  ;;  %v40_v52 = vld [vmem:[%s542_s1 + $0x40] sm:$0xff]  ;;  %v58_v56 = vld [vmem:[%s543_s2 + $0x50] sm:$0xff] }
  0x17   :  { %v103_v44 = vadd.f32 %v87_v40, %v39_v42  ;;  %v89_v51 = vmul.f32 %v73_v48, %v57_v46  ;;  %v41_v53 = vld [vmem:[%s542_s1 + $0x48] sm:$0xff]  ;;  %v59_v57 = vld [vmem:[%s543_s2 + $0x58] sm:$0xff]  ;;  %v74_v58 = vld [vmem:[%s544_s3 + $0x50] sm:$0xff]  ;;  %v198_v34 = vsub.s32 0, %v197_v32 }
  0x18   :  { %v104_v54 = vadd.f32 %v88_v50, %v40_v52  ;;  %v75_v59 = vld [vmem:[%s544_s3 + $0x58] sm:$0xff]  ;;  %v90_v61 = vmul.f32 %v74_v58, %v58_v56  ;;  %v42_v63 = vld [vmem:[%s542_s1 + $0x50] sm:$0xff]  ;;  %v60_v4 = vld [vmem:[%s543_s2 + $0x60] sm:$0xff] }
  0x19   :  { %v279_v49 = vpack.c.bf16 %v103_v44, %v102_v43  ;;  %v105_v55 = vadd.f32 %v89_v51, %v41_v53  ;;  %v91_v62 = vmul.f32 %v75_v59, %v59_v57  ;;  %v43_v0 = vld [vmem:[%s542_s1 + $0x58] sm:$0xff]  ;;  %v61_v5 = vld [vmem:[%s543_s2 + $0x68] sm:$0xff]  ;;  %v76_v6 = vld [vmem:[%s544_s3 + $0x60] sm:$0xff] }
  0x1a   :  { %277 = vmatpush3.bf16.xpose.msra.mxu0 %v276_v38  ;;  %v106_v1 = vadd.f32 %v90_v61, %v42_v63  ;;  %v77_v7 = vld [vmem:[%s544_s3 + $0x68] sm:$0xff]  ;;  %v92_v9 = vmul.f32 %v76_v6, %v60_v4  ;;  %v44_v11 = vld [vmem:[%s542_s1 + $0x60] sm:$0xff]  ;;  %v62_v15 = vld [vmem:[%s543_s2 + $0x70] sm:$0xff] }
  0x1b   :  { %278 = vmatprep.subr.bf16.mxu0 %v321_v3  ;;  %v282_v60 = vpack.c.bf16 %v105_v55, %v104_v54  ;;  %v107_v2 = vadd.f32 %v91_v62, %v43_v0  ;;  %v93_v10 = vmul.f32 %v77_v7, %v61_v5  ;;  %v45_v12 = vld [vmem:[%s542_s1 + $0x68] sm:$0xff]  ;;  %v63_v16 = vld [vmem:[%s543_s2 + $0x78] sm:$0xff]  ;;  %v78_v17 = vld [vmem:[%s544_s3 + $0x70] sm:$0xff] }
  0x1c   :  { %v108_v13 = vadd.f32 %v92_v9, %v44_v11  ;;  %v79_v18 = vld [vmem:[%s544_s3 + $0x78] sm:$0xff]  ;;  %v94_v20 = vmul.f32 %v78_v17, %v62_v15  ;;  %v46_v22 = vld [vmem:[%s542_s1 + $0x70] sm:$0xff]  ;;  %v113_v27 = vld [vmem:[%s541_s0] sm:$0xff]  ;;  %s324_s0 = smov [#allocation3]  }
  0x1d   :  { %v285_v8 = vpack.c.bf16 %v107_v2, %v106_v1  ;;  %v109_v14 = vadd.f32 %v93_v10, %v45_v12  ;;  %v95_v21 = vmul.f32 %v79_v18, %v63_v16  ;;  %v47_v23 = vld [vmem:[%s542_s1 + $0x78] sm:$0xff]  ;;  %v190_v29 = vld [vmem:[%s546_s5] sm:$0x1]  ;;  %s209_s10 = sshll.u32 %s324_s0, 4  ;;  %s210_s10 = int_to_ptr.vmem [resolvable:$true] %s209_s10 }
  0x1e   :  { %v110_v24 = vadd.f32 %v94_v20, %v46_v22  ;;  %v191_v30 = vld [vmem:[%s547_s6] sm:$0x1]  ;;  %s297_s5 = scalar_lea.vmem %s210_s10, 128  ;;  %p302_p1 = scmp.lt.s32.totalorder %s210_s10, %s210_s10 }
  0x1f   :  { %v288_v19 = vpack.c.bf16 %v109_v14, %v108_v13  ;;  %v111_v25 = vadd.f32 %v95_v21, %v47_v23  ;;  %v192_v31 = vmul.f32 %v191_v30, %v190_v29  ;;  %p298_p0 = scmp.ne.s32.totalorder %s210_s10, %s297_s5  ;;  %p303_p2 = scmp.lt.s32.totalorder %s297_s5, %s297_s5 }
  0x21   :  { %v291_v26 = vpack.c.bf16 %v111_v25, %v110_v24  ;;  %p304_p3 = por %p303_p2, %p302_p1 }
  0x22   :  { %280 = vmatpush3.bf16.xpose.msra.mxu0 %v279_v49 }
  0x23   :  { %281 = vmatprep.subr.bf16.mxu0 %v321_v3  ;;  %p305_p4 = pnand %p304_p3, %p298_p0 }
  0x2a   :  { %283 = vmatpush3.bf16.xpose.msra.mxu0 %v282_v60 }
  0x2b   :  { %284 = vmatprep.subr.bf16.mxu0 %v321_v3 }
  0x32   :  { %286 = vmatpush3.bf16.xpose.msra.mxu0 %v285_v8 }
  0x33   :  { %287 = vmatprep.subr.bf16.mxu0 %v321_v3 }
  0x3a   :  { %289 = vmatpush3.bf16.xpose.msra.mxu0 %v288_v19 }
  0x3b   :  { %290 = vmatprep.subr.bf16.mxu0 %v321_v3  ;;  %v189_v3 = vld [vmem:[%s545_s4] sm:$0x1] }
  0x3c   :  { %v193_v33 = vadd.f32 %v192_v31, %v189_v3 }
  0x3e   :  { %v199_v35 = vrot.slane %v193_v33, %v198_v34 }
  0x42   :  { %292 = vmatpush3.bf16.xpose.msra.mxu0 %v291_v26 }
  0x49   :  { %267 = vmatmul.mubr.f32.vlgmr.msra.gmra.mrb[0].mxu0 %v113_v27 }
 0x11c   :  { %v180_v36 = vpop.f32.mrb[0].mxu0 }
 0x11d   :  { %v201_v37 = vadd.f32 %v199_v35, %v180_v36  ;;  %v268_v38 = vpop.f32.mrb[1].mxu0 }
 0x11f   :  { %202 = vst [vmem:[#allocation3] sm:$0xff] %v201_v37 }
 0x120   :  { %308 = shalt.err (!%p305_p4)
}
 0x121   :  { %s309_s4 = scalar_lea.hbm %s548_s7, 128 }
 0x122   :  { %p310_p5 = scmp.ne.s32.totalorder %s548_s7, %s309_s4  ;;  %p313_p6 = scmp.lt.u32.totalorder %s309_s4, %s548_s7 }
 0x124   :  { %p315_p7 = pnand %p313_p6, %p310_p5 }
 0x126   :  { %318 = shalt.err (!%p315_p7)
}
 0x127   :  { %212 = dma.vmem_to_hbm [thread:$0]  %s210_s10, 128, %s548_s7, [#allocation4]  }
 0x128   :  { %319 = dma.done.wait [#allocation4], 128  }
 0x129   :  { %320 = vsyncadd [#allocation4], 4294967168 }
 0x12a   :  { %216 = vsyncpa [#allocation4], 1 }

</bundles_post_ra>
